<compile_context>
chip_gen: v7x
topology: tpu7x:2x2x1
jax: 0.10.0
libtpu: 0.0.40
codegen_flags: <defaults>
</compile_context>

<pallas_src>
import functools

import jax
import jax.numpy as jnp
from jax import lax
from jax.experimental import pallas as pl
from jax.experimental.pallas import tpu as pltpu

_LANES = 128
_SUBLANES = 8
_MAX_ROW_TILE = 512                  # v6e: 512-row tiles ~85% of HBM roofline
_VMEM_BUDGET = 24 * 1024 * 1024      # per-block working-set cap (fits v7x 64 MiB VMEM)
_VMEM_LIMIT = 32 * 1024 * 1024       # explicit scoped-VMEM limit (covers v5e 16 MiB default)


def _round_up(x, m):
    return ((x + m - 1) // m) * m


def _regression_head_kernel(x_ref, w_ref, b_ref, o_ref, *, y_range):
    # x_ref: [TM, feat_pad]       (bf16; last patch, flattened, feat zero-padded)
    # w_ref: [feat_pad, out_pad]  (bf16; transposed at prep time -> plain NN dot)
    # b_ref: [1, out_pad]         (f32)
    # o_ref: [TM, out_pad]        (f32)
    y = lax.dot_general(
        x_ref[...], w_ref[...],
        dimension_numbers=(((1,), (0,)), ((), ())),   # canonical [M,K]x[K,N] MXU feed
        preferred_element_type=jnp.float32)
    y = y + b_ref[...]                                 # broadcast [1, out_pad]
    if y_range is not None:
        low, high = float(y_range[0]), float(y_range[1])
        # Exact sigmoid for parity with the PyTorch head; kernel is memory-bound
        # so the extra EUP/VPU work is free.
        y = (high - low) / (1.0 + jnp.exp(-y)) + low
    o_ref[...] = y.astype(o_ref.dtype)


def prepare_params(weight, bias, *, param_dtype=jnp.bfloat16):
    """One-time (parameter-load time) preparation.

    weight: [output_dim, n_vars*d_model]  (PyTorch nn.Linear layout)
    bias:   [output_dim]

    - transposes once to [feat_pad, out_pad] (no in-kernel transpose),
    - zero-pads feat to a multiple of 128 lanes (lane-dense x loads),
    - pads output_dim only to a multiple of 8 sublanes (avoids the 8x weight
      inflation of 128-lane padding for small heads),
    - casts the weight to bf16 (MXU-native; halves HBM/VMEM bytes).

    Returns (weight_t, bias2d, out_dim).
    """
    out_dim, feat = weight.shape
    feat_pad = _round_up(feat, _LANES)
    out_pad = _round_up(out_dim, _SUBLANES)
    w = jnp.pad(weight, ((0, out_pad - out_dim), (0, feat_pad - feat)))
    weight_t = jnp.asarray(w.T, dtype=param_dtype)                     # [feat_pad, out_pad]
    bias2d = jnp.pad(bias, (0, out_pad - out_dim)).astype(jnp.float32).reshape(1, out_pad)
    return weight_t, bias2d, out_dim


def _choose_tm(bs, feat_pad, out_pad, x_bytes, w_bytes):
    """Row-tile size: whole batch for tiny bs, otherwise >=2 grid steps (v7x
    megacore) capped by _MAX_ROW_TILE and the per-block VMEM budget."""
    if bs <= _SUBLANES:
        return bs                                   # single block == full batch dim
    tm = min(_MAX_ROW_TILE, _round_up(pl.cdiv(bs, 2), _SUBLANES))
    # Double-buffered x/out tiles + (double-buffered) resident weight/bias.
    fixed = 2 * feat_pad * out_pad * w_bytes + 2 * out_pad * 4
    while tm > _SUBLANES and (fixed + 2 * tm * (feat_pad * x_bytes + out_pad * 4)) > _VMEM_BUDGET:
        tm = _round_up(tm // 2, _SUBLANES)
    return tm


@functools.partial(jax.jit, static_argnames=("out_dim", "y_range"))
def regression_head_forward(x, weight_p, bias_p, *, out_dim, y_range=None):
    """x: [bs, n_vars, d_model, num_patch] -> [bs, output_dim].

    weight_p / bias_p come from prepare_params. Dropout is identity at
    inference time (no RNG applied).
    """
    bs, n_vars, d_model, num_patch = x.shape
    feat = n_vars * d_model
    feat_pad, out_pad = weight_p.shape
    assert feat_pad == _round_up(feat, _LANES)

    # Last patch + flatten (x[:,:,:,-1]; nn.Flatten(start_dim=1)), pad K to the
    # weight's padded feature width and cast to the weight dtype so both MXU
    # operands are bf16. allow_input_fusion folds this into the kernel's x DMA.
    x2d = x[:, :, :, num_patch - 1].reshape(bs, feat)
    if feat_pad != feat:
        x2d = jnp.pad(x2d, ((0, 0), (0, feat_pad - feat)))
    x2d = x2d.astype(weight_p.dtype)

    x_bytes = jnp.dtype(x2d.dtype).itemsize
    w_bytes = jnp.dtype(weight_p.dtype).itemsize
    tm = _choose_tm(bs, feat_pad, out_pad, x_bytes, w_bytes)
    grid = (pl.cdiv(bs, tm),)

    cost = pl.CostEstimate(
        flops=2 * bs * feat_pad * out_pad,
        transcendentals=(bs * out_pad) if y_range is not None else 0,
        bytes_accessed=(bs * feat_pad * x_bytes + feat_pad * out_pad * w_bytes
                        + out_pad * 4 + bs * out_pad * 4),
    )

    kernel = functools.partial(_regression_head_kernel, y_range=y_range)

    y = pl.pallas_call(
        kernel,
        out_shape=jax.ShapeDtypeStruct((bs, out_pad), jnp.float32),
        grid_spec=pltpu.PrefetchScalarGridSpec(
            num_scalar_prefetch=0,
            grid=grid,
            in_specs=[
                pl.BlockSpec((tm, feat_pad), lambda i: (i, 0)),        # x rows: tiled
                pl.BlockSpec((feat_pad, out_pad), lambda i: (0, 0)),   # weight: resident
                pl.BlockSpec((1, out_pad), lambda i: (0, 0)),          # bias: resident
            ],
            out_specs=pl.BlockSpec((tm, out_pad), lambda i: (i, 0)),
        ),
        compiler_params=pltpu.CompilerParams(
            dimension_semantics=("parallel",),           # row tiles split across TCs (v7x)
            allow_input_fusion=[True, False, False],     # fuse slice/pad/cast into x DMA
            vmem_limit_bytes=_VMEM_LIMIT,
        ),
        cost_estimate=cost,
    )(x2d, weight_p, bias_p)

    return y[:, :out_dim]


if __name__ == "__main__":
    # Small shapes consistent with the module's forward:
    # x: [bs, n_vars, d_model, num_patch]
    bs, n_vars, d_model, num_patch = 2, 4, 32, 8
    output_dim = 16
    feat = n_vars * d_model

    key = jax.random.PRNGKey(0)
    kx, kw, kb, kx2 = jax.random.split(key, 4)
    x = jax.random.normal(kx, (bs, n_vars, d_model, num_patch), dtype=jnp.float32)
    # Deterministic synthetic parameters (PyTorch nn.Linear layout).
    weight = jax.random.normal(kw, (output_dim, feat), dtype=jnp.float32) * 0.05
    bias = jax.random.normal(kb, (output_dim,), dtype=jnp.float32) * 0.05

    # One-time parameter prep (transpose + pad + bf16) — the "parameter load" step.
    weight_p, bias_p, out_dim = prepare_params(weight, bias)

    def ref_forward(xx, yr=None):
        r = xx[:, :, :, -1].reshape(xx.shape[0], feat) @ weight.T + bias
        if yr is not None:
            r = jax.nn.sigmoid(r) * (yr[1] - yr[0]) + yr[0]
        return r

    # --- no y_range ---
    y = regression_head_forward(x, weight_p, bias_p, out_dim=out_dim, y_range=None)
    jax.block_until_ready(y)
    assert y.shape == (bs, output_dim)
    # bf16 weight/activation -> slightly looser tolerance than f32.
    assert jnp.allclose(y, ref_forward(x), atol=2e-2, rtol=2e-2), "linear mismatch"

    # --- with SigmoidRange ---
    y_range = (0.0, 5.0)
    y2 = regression_head_forward(x, weight_p, bias_p, out_dim=out_dim, y_range=y_range)
    jax.block_until_ready(y2)
    assert jnp.allclose(y2, ref_forward(x, y_range), atol=2e-2, rtol=2e-2), "sigmoid mismatch"

    # --- multi-tile path (grid > 1): exercises row tiling / megacore split ---
    bs2 = 16
    x_big = jax.random.normal(kx2, (bs2, n_vars, d_model, num_patch), dtype=jnp.float32)
    y3 = regression_head_forward(x_big, weight_p, bias_p, out_dim=out_dim, y_range=None)
    jax.block_until_ready(y3)
    assert y3.shape == (bs2, output_dim)
    assert jnp.allclose(y3, ref_forward(x_big), atol=2e-2, rtol=2e-2), "tiled mismatch"

    # TODO(synk): training-mode dropout (RNG mask) not implemented; inference
    # semantics (identity) are used, matching module.eval().
    print("KERNEL_OK")
</pallas_src>

<mosaic_0001>
module attributes {stable_mosaic.version = 11 : i64} {
  func.func @_regression_head_kernel(%arg0: i32, %arg1: memref<2x128xbf16, #tpu.memory_space<vmem>>, %arg2: memref<128x16xbf16, #tpu.memory_space<vmem>>, %arg3: memref<1x16xf32, #tpu.memory_space<vmem>>, %arg4: memref<2x16xf32, #tpu.memory_space<vmem>>) attributes {dimension_semantics = [#tpu.dimension_semantics<parallel>], iteration_bounds = array<i64: 1>, scalar_prefetch = 0 : i64, scratch_operands = 0 : i64, tpu.core_type = #tpu.core_type<tc>, window_params = [{transform_indices = @transform_0, window_bounds = array<i64: 2, 128>}, {pipeline_mode = #tpu.pipeline_mode<synchronous>, transform_indices = @transform_1, window_bounds = array<i64: 128, 16>}, {pipeline_mode = #tpu.pipeline_mode<synchronous>, transform_indices = @transform_2, window_bounds = array<i64: 1, 16>}, {transform_indices = @transform_3, window_bounds = array<i64: 2, 16>}]} {
    %c0 = arith.constant 0 : index
    %c0_0 = arith.constant 0 : index
    %0 = vector.load %arg1[%c0, %c0_0] : memref<2x128xbf16, #tpu.memory_space<vmem>>, vector<2x128xbf16>
    %c0_1 = arith.constant 0 : index
    %c0_2 = arith.constant 0 : index
    %1 = vector.load %arg2[%c0_1, %c0_2] : memref<128x16xbf16, #tpu.memory_space<vmem>>, vector<128x16xbf16>
    %cst = arith.constant dense<0.000000e+00> : vector<2x16xf32>
    %2 = tpu.matmul %0, %1, %cst {dimension_numbers = #tpu.dot_dimension_numbers<[1], [0], [0], [1], [0, 0, 1, 1], [], []>} : vector<2x128xbf16>, vector<128x16xbf16>, vector<2x16xf32> -> vector<2x16xf32>
    %c0_3 = arith.constant 0 : index
    %c0_4 = arith.constant 0 : index
    %3 = vector.load %arg3[%c0_3, %c0_4] : memref<1x16xf32, #tpu.memory_space<vmem>>, vector<1x16xf32>
    %4 = vector.broadcast %3 : vector<1x16xf32> to vector<2x16xf32>
    %5 = arith.addf %2, %4 : vector<2x16xf32>
    %c0_5 = arith.constant 0 : index
    %c0_6 = arith.constant 0 : index
    %6 = vector.load %arg4[%c0_5, %c0_6] : memref<2x16xf32, #tpu.memory_space<vmem>>, vector<2x16xf32>
    tpu.vector_store %arg4[%c0_5, %c0_6], %5 {strides = array<i32>} : memref<2x16xf32, #tpu.memory_space<vmem>>, vector<2x16xf32>,
    return
  }
  func.func @transform_0(%arg0: i32) -> (i32, i32) {
    %c0_i32 = arith.constant 0 : i32
    %c0_i32_0 = arith.constant 0 : i32
    return %arg0, %c0_i32 : i32, i32
  }
  func.func @transform_1(%arg0: i32) -> (i32, i32) {
    %c0_i32 = arith.constant 0 : i32
    %c0_i32_0 = arith.constant 0 : i32
    %c0_i32_1 = arith.constant 0 : i32
    return %c0_i32, %c0_i32_0 : i32, i32
  }
  func.func @transform_2(%arg0: i32) -> (i32, i32) {
    %c0_i32 = arith.constant 0 : i32
    %c0_i32_0 = arith.constant 0 : i32
    %c0_i32_1 = arith.constant 0 : i32
    return %c0_i32, %c0_i32_0 : i32, i32
  }
  func.func @transform_3(%arg0: i32) -> (i32, i32) {
    %c0_i32 = arith.constant 0 : i32
    %c0_i32_0 = arith.constant 0 : i32
    return %arg0, %c0_i32 : i32, i32
  }
}

</mosaic_0001>

<bundles_post_ra>
// kernel: regression_head_forward.1
= control target key start
LH: loop header
LB: loop body
LE: loop exit
PB: predicated region body
PF: predicated region fallthrough
CT: control target
= control target key end

     0   :  { %v217_v1 = vmov 0.0   ;;  %vm218_vm0 = vmmov 0   ;;  %s282_s0 = inlined_call_operand.vmem [shape: bf16[2,128], index: 0, kind: input, shape index: {}]   ;;  %s283_s1 = inlined_call_operand.vmem [shape: bf16[128,16], index: 1, kind: input, shape index: {}]   ;;  %s284_s2 = inlined_call_operand.vmem [shape: f32[1,16], index: 2, kind: input, shape index: {}]   ;;  %s285_s3 = inlined_call_operand.hbm [shape: f32[2,16], index: 3, kind: output, shape index: {}]  }
   0x1   :  { %v185_v0 = vld [vmem:[%s283_s1] sm:$0xff]   ;;  %162 = vmatprep.subr.bf16.mxu0 %v217_v1  ;;  %v186_v2 = vld [vmem:[%s283_s1 + $0x8] sm:$0xff]   ;;  %178 = vmatprep.mubr.msk.bf16.mxu0 %vm218_vm0, %v217_v1  ;;  %v187_v3 = vld [vmem:[%s283_s1 + $0x10] sm:$0xff]  }
   0x2   :  { %163 = vmatpush3.bf16.msra.mxu0 %v185_v0 }
   0x3   :  { %164 = vmatprep.subr.bf16.mxu0 %v217_v1 }
   0x6   :  { %165 = vmatpush3.bf16.msra.mxu0 %v186_v2 }
   0x7   :  { %166 = vmatprep.subr.bf16.mxu0 %v217_v1 }
   0x8   :  { %8 = vsyncpa [#allocation3], 0  ;;  %v188_v4 = vld [vmem:[%s283_s1 + $0x18] sm:$0xff]   ;;  %v189_v5 = vld [vmem:[%s283_s1 + $0x20] sm:$0xff]   ;;  %s219_s5 = smov [#allocation2]   ;;  %vm128_vm1 = vcmask 123904  }
   0x9   :  { %v190_v6 = vld [vmem:[%s283_s1 + $0x28] sm:$0xff]   ;;  %v191_v7 = vld [vmem:[%s283_s1 + $0x30] sm:$0xff]   ;;  %v192_v8 = vld [vmem:[%s283_s1 + $0x38] sm:$0xff]   ;;  %s136_s6 = sshll.u32 %s219_s5, 4  ;;  %s137_s6 = int_to_ptr.vmem [resolvable:$true] %s136_s6 }
   0xa   :  { %167 = vmatpush3.bf16.msra.mxu0 %v187_v3  ;;  %v16_v9 = vld [vmem:[%s282_s0] sm:$0x1]  ;;  %s193_s1 = scalar_lea.vmem %s137_s6, 32  ;;  %p198_p1 = scmp.lt.s32.totalorder %s137_s6, %s137_s6 }
   0xb   :  { %168 = vmatprep.subr.bf16.mxu0 %v217_v1  ;;  %v144_v10 = vld [vmem:[%s284_s2] ss:$0 sm:$0xff]  ;;  %p194_p0 = scmp.ne.s32.totalorder %s137_s6, %s193_s1  ;;  %p199_p2 = scmp.lt.s32.totalorder %s193_s1, %s193_s1 }
   0xd   :  { %p200_p3 = por %p199_p2, %p198_p1 }
   0xe   :  { %169 = vmatpush3.bf16.msra.mxu0 %v188_v4 }
   0xf   :  { %170 = vmatprep.subr.bf16.mxu0 %v217_v1  ;;  %p201_p4 = pnand %p200_p3, %p194_p0 }
  0x12   :  { %171 = vmatpush3.bf16.msra.mxu0 %v189_v5 }
  0x13   :  { %172 = vmatprep.subr.bf16.mxu0 %v217_v1 }
  0x16   :  { %173 = vmatpush3.bf16.msra.mxu0 %v190_v6 }
  0x17   :  { %174 = vmatprep.subr.bf16.mxu0 %v217_v1 }
  0x1a   :  { %175 = vmatpush3.bf16.msra.mxu0 %v191_v7 }
  0x1b   :  { %176 = vmatprep.subr.bf16.mxu0 %v217_v1 }
  0x1e   :  { %177 = vmatpush3.bf16.msra.mxu0 %v192_v8 }
  0x21   :  { %179 = vmatmul.mubr.bf16.vlgmr.msra.gmra.mrb[0].mxu0 %v16_v9 }
  0xf4   :  { %v122_v11 = vpop.f32.mrb[0].mxu0 }
  0xf5   :  { %v123_v12 = vadd.f32 %v144_v10, %v122_v11  ;;  %v180_v13 = vpop.f32.mrb[1].mxu0 }
  0xf6   :  { %v125_v14 = vpop.f32.mrb[2].mxu0 }
  0xf7   :  { %v181_v15 = vpop.f32.mrb[3].mxu0  ;;  %129 = vst.msk [vmem:[#allocation2] sm:$0x3] %vm128_vm1, %v123_v12 }
  0xf8   :  { %204 = shalt.err (!%p201_p4)
}
  0xf9   :  { %s205_s2 = scalar_lea.hbm %s285_s3, 32 }
  0xfa   :  { %p206_p5 = scmp.ne.s32.totalorder %s285_s3, %s205_s2  ;;  %p209_p6 = scmp.lt.u32.totalorder %s205_s2, %s285_s3 }
  0xfc   :  { %p211_p7 = pnand %p209_p6, %p206_p5 }
  0xfe   :  { %214 = shalt.err (!%p211_p7)
}
  0xff   :  { %139 = dma.vmem_to_hbm [thread:$0]  %s137_s6, 32, %s285_s3, [#allocation3]  }
 0x100   :  { %215 = dma.done.wait [#allocation3], 32  }
 0x101   :  { %216 = vsyncadd [#allocation3], 4294967264 }
 0x102   :  { %143 = vsyncpa [#allocation3], 1 }

</bundles_post_ra>
